<compile_context>
chip_gen: v6e
topology: v6e:2x2x1
jax: 0.10.0
libtpu: 0.0.40
codegen_flags: <defaults>
</compile_context>

<pallas_src>
import functools

import jax
import jax.numpy as jnp
from jax.experimental import pallas as pl
from jax.experimental.pallas import tpu as pltpu


_VMEM_LIMIT_BYTES = 48 * 1024 * 1024   # cap scoped VMEM; fits v7x's 64 MiB physical
_VMEM_BUDGET_BYTES = 38 * 1024 * 1024  # ~20% headroom under the limit


def _round_up(x, m):
    return ((x + m - 1) // m) * m


def _mlp_head_kernel(x_ref, w1_ref, b1_ref, w2_ref, b2_ref, o_ref):
    """Fused 2-layer MLP head for one batch tile.

    x_ref : [tb, F]      VMEM  f32   (cast to bf16 in-kernel, on the VPU)
    w1_ref: [F, 128]     VMEM  bf16  (resident, single-buffered)
    b1_ref: [1, 128]     VMEM  f32
    w2_ref: [128, Cp]    VMEM  bf16  (resident, single-buffered)
    b2_ref: [1, Cp]      VMEM  f32
    o_ref : [tb, Cp]     VMEM  f32
    """
    # Layer 1: bf16 MXU matmul with f32 accumulation; bias + ReLU in f32.
    x_bf16 = x_ref[...].astype(jnp.bfloat16)
    h = jnp.dot(x_bf16, w1_ref[...], preferred_element_type=jnp.float32)
    h = jnp.maximum(h + b1_ref[...], 0.0)
    # Dropout(p=0.5) -> identity in eval mode.
    # Layer 2: Linear; hidden activation fed to the MXU in bf16.
    y = jnp.dot(h.astype(jnp.bfloat16), w2_ref[...],
                preferred_element_type=jnp.float32)
    o_ref[...] = (y + b2_ref[...]).astype(o_ref.dtype)


def _vmem_estimate_bytes(block_b, F, H, C_pad):
    """Rough VMEM footprint for one pipelined grid step."""
    x_bytes = 2 * block_b * F * 4              # double-buffered f32 x tile
    o_bytes = 2 * block_b * C_pad * 4          # double-buffered f32 out tile
    w_bytes = F * H * 2 + H * C_pad * 2 + H * 4 + C_pad * 4  # single-buffered params
    h_bytes = block_b * H * 4 + block_b * H * 2              # f32 hidden + bf16 copy
    return x_bytes + o_bytes + w_bytes + h_bytes


def _choose_block_b(B, F, H, C_pad, requested):
    # Never bigger than the (8-rounded) batch itself: small B => single grid step.
    bb = min(requested, _round_up(max(B, 8), 8))
    bb = max(8, _round_up(bb, 8))
    # Shrink until the pipelined working set fits the VMEM budget.
    while bb > 8 and _vmem_estimate_bytes(bb, F, H, C_pad) > _VMEM_BUDGET_BYTES:
        bb = max(8, _round_up(bb // 2, 8))
    return bb


@functools.partial(jax.jit, static_argnames=("block_b",))
def classification_head_multimodal(x, w1, b1, w2, b2, *, block_b=512):
    """x: [B, F] f32. w1: [F, 128], b1: [1, 128], w2: [128, C], b2: [1, C].

    Returns [B, C] float32 logits (matches the PyTorch module's forward in eval mode).
    """
    B, F = x.shape
    H = w1.shape[1]          # 128 (fixed by the module)
    C = w2.shape[1]          # n_classes

    # --- lane-dense output: pad n_classes up to a multiple of 128 -----------
    # (one-time pad of the small W2/b2 params; x and the output rows are NOT padded)
    C_pad = _round_up(C, 128)
    if C_pad != C:
        w2 = jnp.pad(w2, ((0, 0), (0, C_pad - C)))
        b2 = jnp.pad(b2, ((0, 0), (0, C_pad - C)))

    # --- batch tiling: as big a tile as fits VMEM, ragged tail handled ------
    # by Pallas' masked writeback on the partial last block (no jnp.pad of x).
    tb = _choose_block_b(B, F, H, C_pad, block_b)
    n_steps = pl.cdiv(B, tb)

    # --- dtypes: bf16 MXU weights, f32 x (cast in-kernel), f32 biases -------
    w1 = w1.astype(jnp.bfloat16)
    w2 = w2.astype(jnp.bfloat16)
    b1 = b1.astype(jnp.float32)
    b2 = b2.astype(jnp.float32)
    x = x.astype(jnp.float32)

    resident = pl.Buffered(buffer_count=1)   # constant index_map -> 1 buffer is enough

    out = pl.pallas_call(
        _mlp_head_kernel,
        out_shape=jax.ShapeDtypeStruct((B, C_pad), jnp.float32),
        grid_spec=pltpu.PrefetchScalarGridSpec(
            num_scalar_prefetch=0,
            grid=(n_steps,),
            in_specs=[
                pl.BlockSpec((tb, F), lambda i: (i, 0)),                # x tile (f32)
                pl.BlockSpec((F, H), lambda i: (0, 0),
                             pipeline_mode=resident),                   # W1 (resident)
                pl.BlockSpec((1, H), lambda i: (0, 0),
                             pipeline_mode=resident),                   # b1
                pl.BlockSpec((H, C_pad), lambda i: (0, 0),
                             pipeline_mode=resident),                   # W2 (resident)
                pl.BlockSpec((1, C_pad), lambda i: (0, 0),
                             pipeline_mode=resident),                   # b2
            ],
            out_specs=pl.BlockSpec((tb, C_pad), lambda i: (i, 0)),
        ),
        compiler_params=pltpu.CompilerParams(
            dimension_semantics=("parallel",),
            vmem_limit_bytes=_VMEM_LIMIT_BYTES),
    )(x, w1, b1, w2, b2)

    # Only the class-column slice remains (tiny); batch rows were never padded.
    return out[:, :C]


def _reference_f32(x, w1, b1, w2, b2):
    h = jnp.maximum(x @ w1 + b1, 0.0)
    return h @ w2 + b2


def _reference_bf16(x, w1, b1, w2, b2):
    # Mirrors the kernel's dtype handling (bf16 MXU inputs, f32 accumulation).
    h = jnp.dot(x.astype(jnp.bfloat16), w1.astype(jnp.bfloat16),
                preferred_element_type=jnp.float32)
    h = jnp.maximum(h + b1, 0.0)
    y = jnp.dot(h.astype(jnp.bfloat16), w2.astype(jnp.bfloat16),
                preferred_element_type=jnp.float32)
    return y + b2


if __name__ == "__main__":
    # Small shapes consistent with the module: batch=8, n_input_features=32,
    # hidden=128 (fixed by the module), n_classes=10.
    B, F, H, C = 8, 32, 128, 10

    key = jax.random.PRNGKey(0)
    kx, k1, k2, k3, k4 = jax.random.split(key, 5)

    x = jax.random.normal(kx, (B, F), dtype=jnp.float32)

    # Deterministic parameter init (uniform, PyTorch-Linear-like bounds).
    lim1 = 1.0 / (F ** 0.5)
    lim2 = 1.0 / (H ** 0.5)
    w1 = jax.random.uniform(k1, (F, H), minval=-lim1, maxval=lim1, dtype=jnp.float32)
    b1 = jax.random.uniform(k2, (1, H), minval=-lim1, maxval=lim1, dtype=jnp.float32)
    w2 = jax.random.uniform(k3, (H, C), minval=-lim2, maxval=lim2, dtype=jnp.float32)
    b2 = jax.random.uniform(k4, (1, C), minval=-lim2, maxval=lim2, dtype=jnp.float32)

    out = classification_head_multimodal(x, w1, b1, w2, b2)
    out = jax.block_until_ready(out)
    assert out.shape == (B, C), f"bad output shape {out.shape}"

    # Tight check against a reference that mirrors the kernel's bf16/f32 mix.
    ref_bf16 = _reference_bf16(x, w1, b1, w2, b2)
    assert jnp.allclose(out, ref_bf16, atol=1e-3, rtol=1e-3), "mismatch vs bf16 reference"

    # Looser sanity check against the pure-f32 PyTorch-equivalent math.
    ref_f32 = _reference_f32(x, w1, b1, w2, b2)
    assert jnp.allclose(out, ref_f32, atol=5e-2, rtol=5e-2), "mismatch vs f32 reference"

    print("KERNEL_OK")
</pallas_src>

<mosaic_0001>
module attributes {stable_mosaic.version = 11 : i64} {
  func.func @_mlp_head_kernel(%arg0: i32, %arg1: memref<8x32xf32, #tpu.memory_space<vmem>>, %arg2: memref<32x128xbf16, #tpu.memory_space<vmem>>, %arg3: memref<1x128xf32, #tpu.memory_space<vmem>>, %arg4: memref<128x128xbf16, #tpu.memory_space<vmem>>, %arg5: memref<1x128xf32, #tpu.memory_space<vmem>>, %arg6: memref<8x128xf32, #tpu.memory_space<vmem>>) attributes {dimension_semantics = [#tpu.dimension_semantics<parallel>], iteration_bounds = array<i64: 1>, scalar_prefetch = 0 : i64, scratch_operands = 0 : i64, tpu.core_type = #tpu.core_type<tc>, window_params = [{transform_indices = @transform_0, window_bounds = array<i64: 8, 32>}, {pipeline_mode = #tpu.pipeline_mode<synchronous>, transform_indices = @transform_1, window_bounds = array<i64: 32, 128>}, {pipeline_mode = #tpu.pipeline_mode<synchronous>, transform_indices = @transform_2, window_bounds = array<i64: 1, 128>}, {pipeline_mode = #tpu.pipeline_mode<synchronous>, transform_indices = @transform_3, window_bounds = array<i64: 128, 128>}, {pipeline_mode = #tpu.pipeline_mode<synchronous>, transform_indices = @transform_4, window_bounds = array<i64: 1, 128>}, {transform_indices = @transform_5, window_bounds = array<i64: 8, 128>}]} {
    %c0 = arith.constant 0 : index
    %c0_0 = arith.constant 0 : index
    %0 = vector.load %arg1[%c0, %c0_0] : memref<8x32xf32, #tpu.memory_space<vmem>>, vector<8x32xf32>
    %1 = arith.truncf %0 : vector<8x32xf32> to vector<8x32xbf16>
    %c0_1 = arith.constant 0 : index
    %c0_2 = arith.constant 0 : index
    %2 = vector.load %arg2[%c0_1, %c0_2] : memref<32x128xbf16, #tpu.memory_space<vmem>>, vector<32x128xbf16>
    %cst = arith.constant dense<0.000000e+00> : vector<8x128xf32>
    %3 = tpu.matmul %1, %2, %cst {dimension_numbers = #tpu.dot_dimension_numbers<[1], [0], [0], [1], [0, 0, 1, 1], [], []>} : vector<8x32xbf16>, vector<32x128xbf16>, vector<8x128xf32> -> vector<8x128xf32>
    %c0_3 = arith.constant 0 : index
    %c0_4 = arith.constant 0 : index
    %4 = vector.load %arg3[%c0_3, %c0_4] : memref<1x128xf32, #tpu.memory_space<vmem>>, vector<1x128xf32>
    %5 = vector.broadcast %4 : vector<1x128xf32> to vector<8x128xf32>
    %6 = arith.addf %3, %5 : vector<8x128xf32>
    %cst_5 = arith.constant 0.000000e+00 : f32
    %7 = vector.broadcast %cst_5 : f32 to vector<8x128xf32>
    %8 = arith.maximumf %6, %7 : vector<8x128xf32>
    %9 = arith.truncf %8 : vector<8x128xf32> to vector<8x128xbf16>
    %c0_6 = arith.constant 0 : index
    %c0_7 = arith.constant 0 : index
    %10 = vector.load %arg4[%c0_6, %c0_7] : memref<128x128xbf16, #tpu.memory_space<vmem>>, vector<128x128xbf16>
    %cst_8 = arith.constant dense<0.000000e+00> : vector<8x128xf32>
    %11 = tpu.matmul %9, %10, %cst_8 {dimension_numbers = #tpu.dot_dimension_numbers<[1], [0], [0], [1], [0, 0, 1, 1], [], []>} : vector<8x128xbf16>, vector<128x128xbf16>, vector<8x128xf32> -> vector<8x128xf32>
    %c0_9 = arith.constant 0 : index
    %c0_10 = arith.constant 0 : index
    %12 = vector.load %arg5[%c0_9, %c0_10] : memref<1x128xf32, #tpu.memory_space<vmem>>, vector<1x128xf32>
    %13 = vector.broadcast %12 : vector<1x128xf32> to vector<8x128xf32>
    %14 = arith.addf %11, %13 : vector<8x128xf32>
    %c0_11 = arith.constant 0 : index
    %c0_12 = arith.constant 0 : index
    %15 = vector.load %arg6[%c0_11, %c0_12] : memref<8x128xf32, #tpu.memory_space<vmem>>, vector<8x128xf32>
    tpu.vector_store %arg6[%c0_11, %c0_12], %14 {strides = array<i32>} : memref<8x128xf32, #tpu.memory_space<vmem>>, vector<8x128xf32>,
    return
  }
  func.func @transform_0(%arg0: i32) -> (i32, i32) {
    %c0_i32 = arith.constant 0 : i32
    %c0_i32_0 = arith.constant 0 : i32
    return %arg0, %c0_i32 : i32, i32
  }
  func.func @transform_1(%arg0: i32) -> (i32, i32) {
    %c0_i32 = arith.constant 0 : i32
    %c0_i32_0 = arith.constant 0 : i32
    %c0_i32_1 = arith.constant 0 : i32
    return %c0_i32, %c0_i32_0 : i32, i32
  }
  func.func @transform_2(%arg0: i32) -> (i32, i32) {
    %c0_i32 = arith.constant 0 : i32
    %c0_i32_0 = arith.constant 0 : i32
    %c0_i32_1 = arith.constant 0 : i32
    return %c0_i32, %c0_i32_0 : i32, i32
  }
  func.func @transform_3(%arg0: i32) -> (i32, i32) {
    %c0_i32 = arith.constant 0 : i32
    %c0_i32_0 = arith.constant 0 : i32
    %c0_i32_1 = arith.constant 0 : i32
    return %c0_i32, %c0_i32_0 : i32, i32
  }
  func.func @transform_4(%arg0: i32) -> (i32, i32) {
    %c0_i32 = arith.constant 0 : i32
    %c0_i32_0 = arith.constant 0 : i32
    %c0_i32_1 = arith.constant 0 : i32
    return %c0_i32, %c0_i32_0 : i32, i32
  }
  func.func @transform_5(%arg0: i32) -> (i32, i32) {
    %c0_i32 = arith.constant 0 : i32
    %c0_i32_0 = arith.constant 0 : i32
    return %arg0, %c0_i32 : i32, i32
  }
}

</mosaic_0001>

<bundles_post_ra>
// kernel: classification_head_multimodal.1
= control target key start
LH: loop header
LB: loop body
LE: loop exit
PB: predicated region body
PF: predicated region fallthrough
CT: control target
= control target key end

     0   :  { %v307_v1 = vmov 0.0   ;;  %vm308_vm0 = vmmov 0   ;;  %vm47_vm1 = vcmask 261120   ;;  %s382_s0 = inlined_call_operand.vmem [shape: f32[8,32], index: 0, kind: input, shape index: {}]   ;;  %s383_s1 = inlined_call_operand.vmem [shape: bf16[32,128], index: 1, kind: input, shape index: {}]   ;;  %s384_s2 = inlined_call_operand.vmem [shape: f32[1,128], index: 2, kind: input, shape index: {}]   ;;  %s385_s3 = inlined_call_operand.vmem [shape: bf16[128,128], index: 3, kind: input, shape index: {}]   ;;  %s386_s4 = inlined_call_operand.vmem [shape: f32[1,128], index: 4, kind: input, shape index: {}]   ;;  %s387_s5 = inlined_call_operand.hbm [shape: f32[8,128], index: 5, kind: output, shape index: {}]  }
   0x1   :  { %v275_v0 = vld [vmem:[%s383_s1 + $0x8] sm:$0xff]   ;;  %244 = vmatprep.subr.bf16.mxu0 %v307_v1  ;;  %v276_v2 = vld [vmem:[%s383_s1] sm:$0xff]   ;;  %252 = vmatprep.subr.bf16.mxu1 %v307_v1  ;;  %v277_v4 = vld [vmem:[%s385_s3 + $0x38] sm:$0xff]  }
   0x2   :  { %245 = vmatpush3.bf16.msra.mxu0 %v275_v0  ;;  %248 = vmatprep.mubr.msk.bf16.mxu0 %vm308_vm0, %v307_v1  ;;  %v22_v3 = vld [vmem:[%s382_s0] sm:$0xff]  ;;  %v278_v6 = vld [vmem:[%s385_s3 + $0x30] sm:$0xff]   ;;  %v279_v7 = vld [vmem:[%s385_s3 + $0x28] sm:$0xff]  }
   0x3   :  { %246 = vmatprep.subr.bf16.mxu0 %v307_v1  ;;  %268 = vmatprep.mubr.msk.bf16.mxu1 %vm308_vm0, %v307_v1  ;;  %v23_v5 = vpack.c.bf16 %v22_v3, %v22_v3 }
   0x4   :  { %253 = vmatpush3.bf16.msra.mxu1 %v277_v4 }
   0x5   :  { %254 = vmatprep.subr.bf16.mxu1 %v307_v1 }
   0x6   :  { %247 = vmatpush3.bf16.msra.mxu0 %v276_v2 }
   0x8   :  { %255 = vmatpush3.bf16.msra.mxu1 %v278_v6 }
   0x9   :  { %249 = vmatmul.mubr.msk.bf16.vlgmr.msra.gmra.mxu0 %vm47_vm1, %v23_v5  ;;  %256 = vmatprep.subr.bf16.mxu1 %v307_v1 }
   0xa   :  { %10 = vsyncpa [#allocation3], 0  ;;  %v280_v8 = vld [vmem:[%s385_s3 + $0x20] sm:$0xff]   ;;  %v281_v9 = vld [vmem:[%s385_s3 + $0x18] sm:$0xff]   ;;  %s309_s17 = smov [#allocation2]  }
   0xb   :  { %v282_v10 = vld [vmem:[%s385_s3 + $0x10] sm:$0xff]   ;;  %v283_v11 = vld [vmem:[%s385_s3 + $0x8] sm:$0xff]   ;;  %v284_v12 = vld [vmem:[%s385_s3] sm:$0xff]   ;;  %s211_s18 = sshll.u32 %s309_s17, 4  ;;  %s212_s18 = int_to_ptr.vmem [resolvable:$true] %s211_s18 }
   0xc   :  { %257 = vmatpush3.bf16.msra.mxu1 %v279_v7  ;;  %v219_v13 = vld [vmem:[%s384_s2] ss:$0 sm:$0xff]  ;;  %s285_s2 = scalar_lea.vmem %s212_s18, 128  ;;  %p290_p1 = scmp.lt.s32.totalorder %s212_s18, %s212_s18 }
   0xd   :  { %258 = vmatprep.subr.bf16.mxu1 %v307_v1  ;;  %v223_v21 = vld [vmem:[%s386_s4] ss:$0 sm:$0xff]  ;;  %p286_p0 = scmp.ne.s32.totalorder %s212_s18, %s285_s2  ;;  %p291_p2 = scmp.lt.s32.totalorder %s285_s2, %s285_s2 }
   0xf   :  { %p292_p3 = por %p291_p2, %p290_p1 }
  0x10   :  { %259 = vmatpush3.bf16.msra.mxu1 %v280_v8 }
  0x11   :  { %260 = vmatprep.subr.bf16.mxu1 %v307_v1  ;;  %p293_p4 = pnand %p292_p3, %p286_p0 }
  0x14   :  { %261 = vmatpush3.bf16.msra.mxu1 %v281_v9 }
  0x15   :  { %262 = vmatprep.subr.bf16.mxu1 %v307_v1 }
  0x18   :  { %263 = vmatpush3.bf16.msra.mxu1 %v282_v10 }
  0x19   :  { %264 = vmatprep.subr.bf16.mxu1 %v307_v1 }
  0x1c   :  { %265 = vmatpush3.bf16.msra.mxu1 %v283_v11 }
  0x1d   :  { %266 = vmatprep.subr.bf16.mxu1 %v307_v1 }
  0x20   :  { %267 = vmatpush3.bf16.msra.mxu1 %v284_v12 }
  0xc9   :  { %v85_v14 = vpop.f32.mrf.mxu0 }
  0xca   :  { %v86_v15 = vadd.f32 %v219_v13, %v85_v14 }
  0xcb   :  { %v250_v16 = vpop.f32.mrf.mxu0 }
  0xcc   :  { %v91_v17 = vmax.f32 %v86_v15, 0.0 }
  0xcd   :  { %v88_v18 = vpop.f32.mrf.mxu0 }
  0xce   :  { %v92_v19 = vpack.c.bf16 %v91_v17, %v91_v17 }
  0xcf   :  { %v251_v20 = vpop.f32.mrf.mxu0 }
  0xd0   :  { %269 = vmatmul.mubr.bf16.vlgmr.msra.gmra.mxu1 %v92_v19 }
 0x190   :  { %v198_v22 = vpop.f32.mrf.mxu1 }
 0x191   :  { %v199_v23 = vadd.f32 %v223_v21, %v198_v22 }
 0x192   :  { %v270_v24 = vpop.f32.mrf.mxu1 }
 0x193   :  { %204 = vst [vmem:[#allocation2] sm:$0xff] %v199_v23 }
 0x194   :  { %v201_v25 = vpop.f32.mrf.mxu1 }
 0x195   :  { %296 = shalt.err (!%p293_p4)
}
 0x196   :  { %214 = dma.vmem_to_hbm [thread:$0]  %s212_s18, 128, %s387_s5, [#allocation3]   ;;  %v271_v26 = vpop.f32.mrf.mxu1 }
 0x197   :  { %305 = dma.done.wait [#allocation3], 128  }
 0x198   :  { %306 = vsyncadd [#allocation3], 4294967168 }
 0x199   :  { %218 = vsyncpa [#allocation3], 1 }

</bundles_post_ra>
